<compile_context>
chip_gen: v5e
topology: v5e:2x2
jax: 0.10.0
libtpu: 0.0.40
codegen_flags: <defaults>
</compile_context>

<pallas_src>
from functools import partial

import jax
import jax.numpy as jnp
from jax.experimental import pallas as pl
from jax.experimental.pallas import tpu as pltpu

# ---- small, self-consistent synthetic shapes --------------------------------
B = 1             # batch (forward assumes batch 1, like the reference)
SEQ = 8           # prompt length
HIDDEN = 32       # ori_model.lm_head.weight.shape[-1]
VOCAB = 256       # ori_model.lm_head.weight.shape[0]
STOP_TOKEN = 2    # stand-in for tokenizer.convert_tokens_to_ids('<|eot_id|>')
MAX_NEW_TOKENS = 4


# ------------------------------------------------------------------------------
# Single fused kernel: prefill (last prompt position) + greedy decode loop.
# ------------------------------------------------------------------------------
def _decode_kernel(prompt_ref,   # SMEM (SEQ,)        int32 (scalar prefetch)
                   h1_ref,       # VMEM (V, Hp)       f32   tanh(emb@W1+b1), lane-padded
                   wlmT_ref,     # VMEM (Hp, V)       f32   lm_head^T (lane-dense V)
                   toks_ref):    # SMEM (max_new+1,)  int32 output tokens
    vocab = wlmT_ref.shape[-1]
    seq_len = prompt_ref.shape[0]
    max_new = toks_ref.shape[0] - 1

    # Hoisted loop invariants (JAX does not CSE broadcast_in_dim).
    col = jax.lax.broadcasted_iota(jnp.int32, (1, vocab), 1)   # lane indices
    sent = jnp.full((1, vocab), vocab, dtype=jnp.int32)        # argmax sentinel

    def next_token(tok):
        # Folded base model: one (1, Hp) f32 row gather (dynamic sublane offset).
        h = h1_ref[pl.ds(tok, 1), :]                                     # (1, Hp)
        # lm_head: (1, Hp) @ (Hp, V) -> (1, V) logits; never leaves the kernel.
        # TODO(synk): for a loop-invariant RHS this could use explicit MXU
        # staging (pltpu.matmul_push_rhs once, per-token acc_lhs/pop).
        logits = jnp.dot(h, wlmT_ref[...],
                         preferred_element_type=jnp.float32)             # (1, V)
        # Greedy argmax over the vocab, first-occurrence tie-break (torch.argmax).
        mx = jnp.max(logits)
        return jnp.min(jnp.where(logits == mx, col, sent)).astype(jnp.int32)

    # Prefill: only the last prompt position feeds the first sampled token
    # (exact because the stand-in base model is position-wise; a real model
    # needs full-prompt attention / KV cache — see TODO in mer_forward).
    t0 = next_token(prompt_ref[seq_len - 1])
    toks_ref[0] = t0

    # Decode loop (mirrors `for idx in range(max_length)`): the token->token
    # dependence stays in the fori_loop carry (sregs), SMEM is write-only.
    def body(t, carry):
        prev, stopped = carry
        cand = next_token(prev)                       # cheap; always computed
        nt = jnp.where(stopped != 0, jnp.int32(STOP_TOKEN), cand)
        toks_ref[t + 1] = nt                          # side-effect write only
        hit = jnp.logical_or(nt == STOP_TOKEN, prev == STOP_TOKEN)
        return nt, jnp.maximum(stopped, hit.astype(jnp.int32))

    jax.lax.fori_loop(0, max_new, body, (t0, jnp.int32(0)), unroll=True)


def _generate_pallas(prompt, h1, wlm_t, max_new):
    V, Hp = h1.shape
    return pl.pallas_call(
        _decode_kernel,
        out_shape=jax.ShapeDtypeStruct((max_new + 1,), jnp.int32),
        grid_spec=pltpu.PrefetchScalarGridSpec(
            num_scalar_prefetch=1,          # prompt ids -> SMEM
            grid=(1,),
            in_specs=[
                pl.BlockSpec((V, Hp), lambda i, p: (0, 0)),   # folded table (full)
                pl.BlockSpec((Hp, V), lambda i, p: (0, 0)),   # lm_head^T (lane-dense V)
            ],
            out_specs=pl.BlockSpec(memory_space=pltpu.MemorySpace.SMEM),
        ),
        compiler_params=pltpu.CompilerParams(
            dimension_semantics=("arbitrary",)),
    )(prompt, h1, wlm_t)


@partial(jax.jit, static_argnames=("max_new",))
def _generate_jit(prompt, h1, wlm_t, *, max_new):
    new_toks = _generate_pallas(prompt, h1, wlm_t, max_new)
    # Original "append then break" semantics: at least 2 new tokens (prefill
    # token + one decode step) are appended before the stop check can fire.
    is_stop = new_toks == STOP_TOKEN
    first = jnp.argmax(is_stop)
    n_new = jnp.where(jnp.any(is_stop),
                      jnp.clip(first + 1, 2, new_toks.shape[0]),
                      new_toks.shape[0]).astype(jnp.int32)
    full = jnp.concatenate([prompt, new_toks])
    return full, n_new


# ------------------------------------------------------------------------------
# Mer_Model.forward equivalent (greedy / temperature == 0 branch).
# ------------------------------------------------------------------------------
def mer_forward(input_ids, dev_params, max_length=MAX_NEW_TOKENS):
    # TODO(synk): spec_model.topK_genrate (speculative draft-tree generation),
    # the tokenizer / eos_token_id lookup, past_key_values KV-cache plumbing
    # and the temperature>0 multinomial-sampling branch have no standalone
    # Pallas equivalent; greedy single-model decode is implemented instead.
    prompt = input_ids[0].astype(jnp.int32)                     # batch-1 forward
    full, n_new = _generate_jit(prompt,
                                dev_params["h1"],
                                dev_params["lm_head_t"],
                                max_new=max_length)
    jax.block_until_ready((full, n_new))
    total = prompt.shape[0] + int(n_new)   # single host sync at the very end
    return full[None, :total]


# ------------------------------------------------------------------------------
# Parameters: PyTorch layout ([V, H] embedding / lm_head), then a one-time
# device-layout prep that folds the position-wise base model into a table.
# ------------------------------------------------------------------------------
def init_params(key):
    k0, k1, k2, k3 = jax.random.split(key, 4)
    return {
        "embedding": 0.02 * jax.random.normal(k0, (VOCAB, HIDDEN), jnp.float32),
        "w1":        0.02 * jax.random.normal(k1, (HIDDEN, HIDDEN), jnp.float32),
        "b1":        0.02 * jax.random.normal(k2, (1, HIDDEN), jnp.float32),
        "lm_head":   0.02 * jax.random.normal(k3, (VOCAB, HIDDEN), jnp.float32),
    }


def prepare_device_params(params):
    emb = params["embedding"].astype(jnp.float32)
    w1 = params["w1"].astype(jnp.float32)
    b1 = params["b1"].astype(jnp.float32)
    # Fold the stand-in base model into the table: H1[v] = tanh(emb[v] @ W1 + b1).
    # Only valid because the stand-in base model is position-wise / stateless.
    h1 = jnp.tanh(emb @ w1 + b1)                                  # (V, H) f32
    wlm_t = jnp.transpose(params["lm_head"]).astype(jnp.float32)  # (H, V) f32
    # Zero-pad the hidden dim to full 128 lanes: unmasked row loads, free MACs.
    h = h1.shape[1]
    hp = max(128, ((h + 127) // 128) * 128)
    h1 = jnp.pad(h1, ((0, 0), (0, hp - h)))
    wlm_t = jnp.pad(wlm_t, ((0, hp - h), (0, 0)))
    return {"h1": h1, "lm_head_t": wlm_t}


if __name__ == "__main__":
    key = jax.random.PRNGKey(0)
    k_params, k_ids = jax.random.split(key)

    params = init_params(k_params)
    dev_params = prepare_device_params(params)

    # deterministic prompt token ids, shape [1, SEQ] (avoid the stop token)
    input_ids = jax.random.randint(k_ids, (B, SEQ),
                                   minval=3, maxval=VOCAB, dtype=jnp.int32)

    out_ids = mer_forward(input_ids, dev_params, max_length=MAX_NEW_TOKENS)
    jax.block_until_ready(out_ids)

    assert out_ids.shape[0] == 1
    assert out_ids.shape[1] > SEQ
    assert out_ids.shape[1] <= SEQ + MAX_NEW_TOKENS + 1
    print("KERNEL_OK")
</pallas_src>

<mosaic_0001>
module attributes {stable_mosaic.version = 11 : i64} {
  func.func @_decode_kernel(%arg0: i32, %arg1: memref<8xi32, #tpu.memory_space<smem>>, %arg2: memref<256x128xf32, #tpu.memory_space<vmem>>, %arg3: memref<128x256xf32, #tpu.memory_space<vmem>>, %arg4: memref<5xi32, #tpu.memory_space<smem>>) attributes {dimension_semantics = [#tpu.dimension_semantics<arbitrary>], iteration_bounds = array<i64: 1>, scalar_prefetch = 1 : i64, scratch_operands = 0 : i64, tpu.core_type = #tpu.core_type<tc>, window_params = [{pipeline_mode = #tpu.pipeline_mode<synchronous>, transform_indices = @transform_0, window_bounds = array<i64: 256, 128>}, {pipeline_mode = #tpu.pipeline_mode<synchronous>, transform_indices = @transform_1, window_bounds = array<i64: 128, 256>}, {transform_indices = @transform_2, window_bounds = array<i64: 5>}]} {
    %0 = tpu.iota {dimensions = array<i32: 1>} : vector<1x256xi32>
    %c256_i32 = arith.constant 256 : i32
    %1 = vector.broadcast %c256_i32 : i32 to vector<1x256xi32>
    %c7 = arith.constant 7 : index
    %2 = memref.load %arg1[%c7] : memref<8xi32, #tpu.memory_space<smem>>
    %3 = arith.index_cast %2 : i32 to index
    %c0 = arith.constant 0 : index
    %4 = vector.load %arg2[%3, %c0] : memref<256x128xf32, #tpu.memory_space<vmem>>, vector<1x128xf32>
    %c0_0 = arith.constant 0 : index
    %c0_1 = arith.constant 0 : index
    %5 = vector.load %arg3[%c0_0, %c0_1] : memref<128x256xf32, #tpu.memory_space<vmem>>, vector<128x256xf32>
    %cst = arith.constant dense<0.000000e+00> : vector<1x256xf32>
    %6 = tpu.matmul %4, %5, %cst {dimension_numbers = #tpu.dot_dimension_numbers<[1], [0], [0], [1], [0, 0, 1, 1], [], []>} : vector<1x128xf32>, vector<128x256xf32>, vector<1x256xf32> -> vector<1x256xf32>
    %7 = vector.shape_cast %6 : vector<1x256xf32> to vector<1x1x256xf32>
    %cst_2 = arith.constant dense<0xFF800000> : vector<1xf32>
    %8 = vector.multi_reduction <maximumf>, %7, %cst_2 [1, 2] : vector<1x1x256xf32> to vector<1xf32>
    %9 = vector.shape_cast %8 : vector<1xf32> to vector<1x1x1xf32>
    %10 = vector.extract %9[0, 0, 0] : f32 from vector<1x1x1xf32>
    %11 = vector.broadcast %10 : f32 to vector<1x256xf32>
    %12 = arith.cmpf oeq, %6, %11 : vector<1x256xf32>
    %13 = arith.select %12, %0, %1 : vector<1x256xi1>, vector<1x256xi32>
    %14 = vector.shape_cast %13 : vector<1x256xi32> to vector<1x1x256xi32>
    %cst_3 = arith.constant dense<2147483647> : vector<1xi32>
    %15 = vector.multi_reduction <minsi>, %14, %cst_3 [1, 2] : vector<1x1x256xi32> to vector<1xi32>
    %16 = vector.shape_cast %15 : vector<1xi32> to vector<1x1x1xi32>
    %17 = vector.extract %16[0, 0, 0] : i32 from vector<1x1x1xi32>
    %c0_4 = arith.constant 0 : index
    %18 = memref.load %arg4[%c0_4] : memref<5xi32, #tpu.memory_space<smem>>
    memref.store %17, %arg4[%c0_4] : memref<5xi32, #tpu.memory_space<smem>>
    %c0_i32 = arith.constant 0 : i32
    %c0_i32_5 = arith.constant 0 : i32
    %19 = arith.index_cast %17 : i32 to index
    %c0_6 = arith.constant 0 : index
    %20 = vector.load %arg2[%19, %c0_6] : memref<256x128xf32, #tpu.memory_space<vmem>>, vector<1x128xf32>
    %c0_7 = arith.constant 0 : index
    %c0_8 = arith.constant 0 : index
    %21 = vector.load %arg3[%c0_7, %c0_8] : memref<128x256xf32, #tpu.memory_space<vmem>>, vector<128x256xf32>
    %cst_9 = arith.constant dense<0.000000e+00> : vector<1x256xf32>
    %22 = tpu.matmul %20, %21, %cst_9 {dimension_numbers = #tpu.dot_dimension_numbers<[1], [0], [0], [1], [0, 0, 1, 1], [], []>} : vector<1x128xf32>, vector<128x256xf32>, vector<1x256xf32> -> vector<1x256xf32>
    %23 = vector.shape_cast %22 : vector<1x256xf32> to vector<1x1x256xf32>
    %cst_10 = arith.constant dense<0xFF800000> : vector<1xf32>
    %24 = vector.multi_reduction <maximumf>, %23, %cst_10 [1, 2] : vector<1x1x256xf32> to vector<1xf32>
    %25 = vector.shape_cast %24 : vector<1xf32> to vector<1x1x1xf32>
    %26 = vector.extract %25[0, 0, 0] : f32 from vector<1x1x1xf32>
    %27 = vector.broadcast %26 : f32 to vector<1x256xf32>
    %28 = arith.cmpf oeq, %22, %27 : vector<1x256xf32>
    %29 = arith.select %28, %0, %1 : vector<1x256xi1>, vector<1x256xi32>
    %30 = vector.shape_cast %29 : vector<1x256xi32> to vector<1x1x256xi32>
    %cst_11 = arith.constant dense<2147483647> : vector<1xi32>
    %31 = vector.multi_reduction <minsi>, %30, %cst_11 [1, 2] : vector<1x1x256xi32> to vector<1xi32>
    %32 = vector.shape_cast %31 : vector<1xi32> to vector<1x1x1xi32>
    %33 = vector.extract %32[0, 0, 0] : i32 from vector<1x1x1xi32>
    %c0_i32_12 = arith.constant 0 : i32
    %34 = arith.cmpi ne, %c0_i32, %c0_i32_12 : i32
    %c2_i32 = arith.constant 2 : i32
    %35 = arith.select %34, %c2_i32, %33 : i32
    %c1_i32 = arith.constant 1 : i32
    %36 = arith.addi %c0_i32_5, %c1_i32 : i32
    %37 = arith.index_cast %36 : i32 to index
    %38 = memref.load %arg4[%37] : memref<5xi32, #tpu.memory_space<smem>>
    memref.store %35, %arg4[%37] : memref<5xi32, #tpu.memory_space<smem>>
    %c2_i32_13 = arith.constant 2 : i32
    %39 = arith.cmpi eq, %35, %c2_i32_13 : i32
    %c2_i32_14 = arith.constant 2 : i32
    %40 = arith.cmpi eq, %17, %c2_i32_14 : i32
    %41 = arith.ori %39, %40 : i1
    %42 = arith.extui %41 : i1 to i32
    %43 = arith.maxsi %c0_i32, %42 : i32
    %c1_i32_15 = arith.constant 1 : i32
    %44 = arith.index_cast %35 : i32 to index
    %c0_16 = arith.constant 0 : index
    %45 = vector.load %arg2[%44, %c0_16] : memref<256x128xf32, #tpu.memory_space<vmem>>, vector<1x128xf32>
    %c0_17 = arith.constant 0 : index
    %c0_18 = arith.constant 0 : index
    %46 = vector.load %arg3[%c0_17, %c0_18] : memref<128x256xf32, #tpu.memory_space<vmem>>, vector<128x256xf32>
    %cst_19 = arith.constant dense<0.000000e+00> : vector<1x256xf32>
    %47 = tpu.matmul %45, %46, %cst_19 {dimension_numbers = #tpu.dot_dimension_numbers<[1], [0], [0], [1], [0, 0, 1, 1], [], []>} : vector<1x128xf32>, vector<128x256xf32>, vector<1x256xf32> -> vector<1x256xf32>
    %48 = vector.shape_cast %47 : vector<1x256xf32> to vector<1x1x256xf32>
    %cst_20 = arith.constant dense<0xFF800000> : vector<1xf32>
    %49 = vector.multi_reduction <maximumf>, %48, %cst_20 [1, 2] : vector<1x1x256xf32> to vector<1xf32>
    %50 = vector.shape_cast %49 : vector<1xf32> to vector<1x1x1xf32>
    %51 = vector.extract %50[0, 0, 0] : f32 from vector<1x1x1xf32>
    %52 = vector.broadcast %51 : f32 to vector<1x256xf32>
    %53 = arith.cmpf oeq, %47, %52 : vector<1x256xf32>
    %54 = arith.select %53, %0, %1 : vector<1x256xi1>, vector<1x256xi32>
    %55 = vector.shape_cast %54 : vector<1x256xi32> to vector<1x1x256xi32>
    %cst_21 = arith.constant dense<2147483647> : vector<1xi32>
    %56 = vector.multi_reduction <minsi>, %55, %cst_21 [1, 2] : vector<1x1x256xi32> to vector<1xi32>
    %57 = vector.shape_cast %56 : vector<1xi32> to vector<1x1x1xi32>
    %58 = vector.extract %57[0, 0, 0] : i32 from vector<1x1x1xi32>
    %c0_i32_22 = arith.constant 0 : i32
    %59 = arith.cmpi ne, %43, %c0_i32_22 : i32
    %c2_i32_23 = arith.constant 2 : i32
    %60 = arith.select %59, %c2_i32_23, %58 : i32
    %c1_i32_24 = arith.constant 1 : i32
    %61 = arith.addi %c1_i32_15, %c1_i32_24 : i32
    %62 = arith.index_cast %61 : i32 to index
    %63 = memref.load %arg4[%62] : memref<5xi32, #tpu.memory_space<smem>>
    memref.store %60, %arg4[%62] : memref<5xi32, #tpu.memory_space<smem>>
    %c2_i32_25 = arith.constant 2 : i32
    %64 = arith.cmpi eq, %60, %c2_i32_25 : i32
    %c2_i32_26 = arith.constant 2 : i32
    %65 = arith.cmpi eq, %35, %c2_i32_26 : i32
    %66 = arith.ori %64, %65 : i1
    %67 = arith.extui %66 : i1 to i32
    %68 = arith.maxsi %43, %67 : i32
    %c2_i32_27 = arith.constant 2 : i32
    %69 = arith.index_cast %60 : i32 to index
    %c0_28 = arith.constant 0 : index
    %70 = vector.load %arg2[%69, %c0_28] : memref<256x128xf32, #tpu.memory_space<vmem>>, vector<1x128xf32>
    %c0_29 = arith.constant 0 : index
    %c0_30 = arith.constant 0 : index
    %71 = vector.load %arg3[%c0_29, %c0_30] : memref<128x256xf32, #tpu.memory_space<vmem>>, vector<128x256xf32>
    %cst_31 = arith.constant dense<0.000000e+00> : vector<1x256xf32>
    %72 = tpu.matmul %70, %71, %cst_31 {dimension_numbers = #tpu.dot_dimension_numbers<[1], [0], [0], [1], [0, 0, 1, 1], [], []>} : vector<1x128xf32>, vector<128x256xf32>, vector<1x256xf32> -> vector<1x256xf32>
    %73 = vector.shape_cast %72 : vector<1x256xf32> to vector<1x1x256xf32>
    %cst_32 = arith.constant dense<0xFF800000> : vector<1xf32>
    %74 = vector.multi_reduction <maximumf>, %73, %cst_32 [1, 2] : vector<1x1x256xf32> to vector<1xf32>
    %75 = vector.shape_cast %74 : vector<1xf32> to vector<1x1x1xf32>
    %76 = vector.extract %75[0, 0, 0] : f32 from vector<1x1x1xf32>
    %77 = vector.broadcast %76 : f32 to vector<1x256xf32>
    %78 = arith.cmpf oeq, %72, %77 : vector<1x256xf32>
    %79 = arith.select %78, %0, %1 : vector<1x256xi1>, vector<1x256xi32>
    %80 = vector.shape_cast %79 : vector<1x256xi32> to vector<1x1x256xi32>
    %cst_33 = arith.constant dense<2147483647> : vector<1xi32>
    %81 = vector.multi_reduction <minsi>, %80, %cst_33 [1, 2] : vector<1x1x256xi32> to vector<1xi32>
    %82 = vector.shape_cast %81 : vector<1xi32> to vector<1x1x1xi32>
    %83 = vector.extract %82[0, 0, 0] : i32 from vector<1x1x1xi32>
    %c0_i32_34 = arith.constant 0 : i32
    %84 = arith.cmpi ne, %68, %c0_i32_34 : i32
    %c2_i32_35 = arith.constant 2 : i32
    %85 = arith.select %84, %c2_i32_35, %83 : i32
    %c1_i32_36 = arith.constant 1 : i32
    %86 = arith.addi %c2_i32_27, %c1_i32_36 : i32
    %87 = arith.index_cast %86 : i32 to index
    %88 = memref.load %arg4[%87] : memref<5xi32, #tpu.memory_space<smem>>
    memref.store %85, %arg4[%87] : memref<5xi32, #tpu.memory_space<smem>>
    %c2_i32_37 = arith.constant 2 : i32
    %89 = arith.cmpi eq, %85, %c2_i32_37 : i32
    %c2_i32_38 = arith.constant 2 : i32
    %90 = arith.cmpi eq, %60, %c2_i32_38 : i32
    %91 = arith.ori %89, %90 : i1
    %92 = arith.extui %91 : i1 to i32
    %93 = arith.maxsi %68, %92 : i32
    %c3_i32 = arith.constant 3 : i32
    %94 = arith.index_cast %85 : i32 to index
    %c0_39 = arith.constant 0 : index
    %95 = vector.load %arg2[%94, %c0_39] : memref<256x128xf32, #tpu.memory_space<vmem>>, vector<1x128xf32>
    %c0_40 = arith.constant 0 : index
    %c0_41 = arith.constant 0 : index
    %96 = vector.load %arg3[%c0_40, %c0_41] : memref<128x256xf32, #tpu.memory_space<vmem>>, vector<128x256xf32>
    %cst_42 = arith.constant dense<0.000000e+00> : vector<1x256xf32>
    %97 = tpu.matmul %95, %96, %cst_42 {dimension_numbers = #tpu.dot_dimension_numbers<[1], [0], [0], [1], [0, 0, 1, 1], [], []>} : vector<1x128xf32>, vector<128x256xf32>, vector<1x256xf32> -> vector<1x256xf32>
    %98 = vector.shape_cast %97 : vector<1x256xf32> to vector<1x1x256xf32>
    %cst_43 = arith.constant dense<0xFF800000> : vector<1xf32>
    %99 = vector.multi_reduction <maximumf>, %98, %cst_43 [1, 2] : vector<1x1x256xf32> to vector<1xf32>
    %100 = vector.shape_cast %99 : vector<1xf32> to vector<1x1x1xf32>
    %101 = vector.extract %100[0, 0, 0] : f32 from vector<1x1x1xf32>
    %102 = vector.broadcast %101 : f32 to vector<1x256xf32>
    %103 = arith.cmpf oeq, %97, %102 : vector<1x256xf32>
    %104 = arith.select %103, %0, %1 : vector<1x256xi1>, vector<1x256xi32>
    %105 = vector.shape_cast %104 : vector<1x256xi32> to vector<1x1x256xi32>
    %cst_44 = arith.constant dense<2147483647> : vector<1xi32>
    %106 = vector.multi_reduction <minsi>, %105, %cst_44 [1, 2] : vector<1x1x256xi32> to vector<1xi32>
    %107 = vector.shape_cast %106 : vector<1xi32> to vector<1x1x1xi32>
    %108 = vector.extract %107[0, 0, 0] : i32 from vector<1x1x1xi32>
    %c0_i32_45 = arith.constant 0 : i32
    %109 = arith.cmpi ne, %93, %c0_i32_45 : i32
    %c2_i32_46 = arith.constant 2 : i32
    %110 = arith.select %109, %c2_i32_46, %108 : i32
    %c1_i32_47 = arith.constant 1 : i32
    %111 = arith.addi %c3_i32, %c1_i32_47 : i32
    %112 = arith.index_cast %111 : i32 to index
    %113 = memref.load %arg4[%112] : memref<5xi32, #tpu.memory_space<smem>>
    memref.store %110, %arg4[%112] : memref<5xi32, #tpu.memory_space<smem>>
    %c2_i32_48 = arith.constant 2 : i32
    %114 = arith.cmpi eq, %110, %c2_i32_48 : i32
    %c2_i32_49 = arith.constant 2 : i32
    %115 = arith.cmpi eq, %85, %c2_i32_49 : i32
    %116 = arith.ori %114, %115 : i1
    %117 = arith.extui %116 : i1 to i32
    %118 = arith.maxsi %93, %117 : i32
    %c4_i32 = arith.constant 4 : i32
    return
  }
  func.func @transform_0(%arg0: i32, %arg1: memref<8xi32, #tpu.memory_space<smem>>) -> (i32, i32) {
    %c0_i32 = arith.constant 0 : i32
    %c0_i32_0 = arith.constant 0 : i32
    %c0_i32_1 = arith.constant 0 : i32
    return %c0_i32, %c0_i32_0 : i32, i32
  }
  func.func @transform_1(%arg0: i32, %arg1: memref<8xi32, #tpu.memory_space<smem>>) -> (i32, i32) {
    %c0_i32 = arith.constant 0 : i32
    %c0_i32_0 = arith.constant 0 : i32
    %c0_i32_1 = arith.constant 0 : i32
    return %c0_i32, %c0_i32_0 : i32, i32
  }
  func.func @transform_2(%arg0: i32, %arg1: memref<8xi32, #tpu.memory_space<smem>>) -> i32 {
    %c0_i32 = arith.constant 0 : i32
    %c0_i32_0 = arith.constant 0 : i32
    return %c0_i32 : i32
  }
}

</mosaic_0001>

<bundles_post_ra>
// kernel: _generate_jit.1
= control target key start
LH: loop header
LB: loop body
LE: loop exit
PB: predicated region body
PF: predicated region fallthrough
CT: control target
= control target key end

     0   :  { %s815_s15 = smov [#allocation3]   ;;  %s1155_s0 = inlined_call_operand.hbm [shape: s32[8], index: 0, kind: input, shape index: {}]   ;;  %s1156_s1 = inlined_call_operand.hbm [shape: f32[256,128], index: 1, kind: input, shape index: {}]   ;;  %s1157_s2 = inlined_call_operand.hbm [shape: f32[128,256], index: 2, kind: input, shape index: {}]   ;;  %s1158_s3 = inlined_call_operand.vmem [shape: s32[5], index: 3, kind: output, shape index: {}]  }
   0x1   :  { %s9_s14 = sshll.u32 %s1155_s0, 4  ;;  %s10_s14 = int_to_ptr.hbm [resolvable:$true] %s9_s14 }
   0x2   :  { %12 = dma.hbm_to_smem %s10_s14, 16, %s815_s15, [#allocation2] }
   0x3   :  { %807 = dma.done.wait [#allocation2], 16 }
   0x4   :  { %808 = vsyncadd [#allocation2], 4294967280 }
   0x5   :  { %15 = sfence }
   0x6   :  { %16 = vsyncpa [#allocation5], 0 }
   0x7   :  { %17 = vsyncpa [#allocation8], 0 }
   0x8   :  { %18 = vsyncpa [#allocation6], 0  ;;  %s23_s18 = sshll.u32 %s1156_s1, 4  ;;  %s816_s19 = smov [#allocation4]   ;;  %s24_s18 = int_to_ptr.hbm [resolvable:$true] %s23_s18 }
   0x9   :  { %s25_s20 = sshll.u32 %s816_s19, 4  ;;  %s36_s0 = sshll.u32 %s1157_s2, 4  ;;  %s26_s20 = int_to_ptr.vmem [resolvable:$true] %s25_s20  ;;  %s37_s0 = int_to_ptr.hbm [resolvable:$true] %s36_s0 }
   0xa   :  { %s817_s23 = smov 128   ;;  %s818_s24 = smov 8  }
   0xb   :  { %31 = dma.hbm_to_vmem [thread:$0]  %s24_s18, 4096, %s26_s20, [#allocation5], %s817_s23, %s817_s23, %s818_s24  }
   0xc   :  { %s819_s25 = smov [#allocation7]   ;;  %s820_s27 = smov 256  }
   0xd   :  { %s38_s26 = sshll.u32 %s819_s25, 4  ;;  %s821_s28 = smov 16   ;;  %s39_s26 = int_to_ptr.vmem [resolvable:$true] %s38_s26 }
   0xe   :  { %44 = dma.hbm_to_vmem [thread:$0]  %s37_s0, 4096, %s39_s26, [#allocation8], %s820_s27, %s820_s27, %s821_s28  }
   0xf   :  { %809 = dma.done.wait [#allocation5], 4096  }
  0x10   :  { %810 = vsyncadd [#allocation5], 4294963200 }
  0x11   :  { %811 = dma.done.wait [#allocation8], 4096  }
  0x12   :  { %812 = vsyncadd [#allocation8], 4294963200  ;;  %v852_v0 = vld [vmem:[#allocation7 + $0xf0] sm:$0xff]  ;;  %v854_v1 = vld [vmem:[#allocation7 + $0xf8] sm:$0xff]  ;;  %s930_s1 = sld [smem:[#allocation3 + $0x7]]  ;;  %vm131_vm0 = vcmask 1040384   ;;  %v53_v45 = vlaneseq }
  0x13   :  { %v856_v2 = vld [vmem:[#allocation7 + $0xe0] sm:$0xff]  ;;  %91 = vmatpush.msra.mxu0 %v852_v0  ;;  %111 = vmatpush.msra.mxu1 %v854_v1  ;;  %v860_v3 = vld [vmem:[#allocation7 + $0xe8] sm:$0xff]  ;;  %v862_v4 = vld [vmem:[#allocation7 + $0xd0] sm:$0xff]  ;;  %s689_s20 = sshll.u32 %s1158_s3, 4  ;;  %s822_s22 = smov [#allocation9]   ;;  %s690_s20 = int_to_ptr.vmem [resolvable:$true] %s689_s20 }
  0x14   :  { %v864_v5 = vld [vmem:[#allocation7 + $0xd8] sm:$0xff]  ;;  %213 = vmatpush.msra.mxu2 %v852_v0  ;;  %233 = vmatpush.msra.mxu3 %v854_v1  ;;  %v870_v6 = vld [vmem:[#allocation7 + $0xc0] sm:$0xff]  ;;  %v872_v7 = vld [vmem:[#allocation7 + $0xc8] sm:$0xff]  ;;  %v1081_v46 = vand.u32 127, %v53_v45 }
  0x15   :  { %92 = vmatpush.msra.mxu0 %v856_v2  ;;  %112 = vmatpush.msra.mxu1 %v860_v3  ;;  %v878_v8 = vld [vmem:[#allocation7 + $0xb0] sm:$0xff]  ;;  %v880_v9 = vld [vmem:[#allocation7 + $0xb8] sm:$0xff]  ;;  %v886_v10 = vld [vmem:[#allocation7 + $0xa0] sm:$0xff] }
  0x16   :  { %214 = vmatpush.msra.mxu2 %v856_v2  ;;  %234 = vmatpush.msra.mxu3 %v860_v3  ;;  %v888_v11 = vld [vmem:[#allocation7 + $0xa8] sm:$0xff]  ;;  %v894_v12 = vld [vmem:[#allocation7 + $0x90] sm:$0xff]  ;;  %v896_v13 = vld [vmem:[#allocation7 + $0x98] sm:$0xff]  ;;  %v1084_v47 = vadd.s32 128, %v1081_v46 }
  0x17   :  { %93 = vmatpush.msra.mxu0 %v862_v4  ;;  %113 = vmatpush.msra.mxu1 %v864_v5  ;;  %v902_v14 = vld [vmem:[#allocation7 + $0x80] sm:$0xff]  ;;  %v904_v15 = vld [vmem:[#allocation7 + $0x88] sm:$0xff]  ;;  %v910_v16 = vld [vmem:[#allocation7 + $0x70] sm:$0xff] }
  0x18   :  { %215 = vmatpush.msra.mxu2 %v862_v4  ;;  %235 = vmatpush.msra.mxu3 %v864_v5  ;;  %v912_v17 = vld [vmem:[#allocation7 + $0x78] sm:$0xff]  ;;  %v918_v18 = vld [vmem:[#allocation7 + $0x60] sm:$0xff]  ;;  %v920_v19 = vld [vmem:[#allocation7 + $0x68] sm:$0xff]  ;;  %s57_s2 = scalar_lea.vmem [#allocation4], %s930_s1 }
  0x19   :  { %94 = vmatpush.msra.mxu0 %v870_v6  ;;  %114 = vmatpush.msra.mxu1 %v872_v7  ;;  %v926_v20 = vld [vmem:[#allocation7 + $0x50] sm:$0xff]  ;;  %v928_v21 = vld [vmem:[#allocation7 + $0x58] sm:$0xff]  ;;  %v936_v22 = vld [vmem:[#allocation7 + $0x40] sm:$0xff] }
  0x1a   :  { %216 = vmatpush.msra.mxu2 %v870_v6  ;;  %236 = vmatpush.msra.mxu3 %v872_v7  ;;  %v938_v23 = vld [vmem:[#allocation7 + $0x48] sm:$0xff]  ;;  %v944_v24 = vld [vmem:[#allocation7 + $0x30] sm:$0xff]  ;;  %v946_v25 = vld [vmem:[#allocation7 + $0x38] sm:$0xff] }
  0x1b   :  { %95 = vmatpush.msra.mxu0 %v878_v8  ;;  %115 = vmatpush.msra.mxu1 %v880_v9  ;;  %v952_v26 = vld [vmem:[#allocation7 + $0x20] sm:$0xff]  ;;  %v954_v27 = vld [vmem:[#allocation7 + $0x28] sm:$0xff]  ;;  %v960_v28 = vld [vmem:[#allocation7 + $0x10] sm:$0xff] }
  0x1c   :  { %217 = vmatpush.msra.mxu2 %v878_v8  ;;  %237 = vmatpush.msra.mxu3 %v880_v9  ;;  %v962_v29 = vld [vmem:[#allocation7 + $0x18] sm:$0xff]  ;;  %v968_v30 = vld [vmem:[#allocation7] sm:$0xff]  ;;  %v970_v31 = vld [vmem:[#allocation7 + $0x8] sm:$0xff] }
  0x1d   :  { %96 = vmatpush.msra.mxu0 %v886_v10  ;;  %116 = vmatpush.msra.mxu1 %v888_v11  ;;  %v58_v32 = vld [vmem:[%s57_s2] sm:$0x1] }
  0x1e   :  { %218 = vmatpush.msra.mxu2 %v886_v10  ;;  %238 = vmatpush.msra.mxu3 %v888_v11 }
  0x1f   :  { %97 = vmatpush.msra.mxu0 %v894_v12  ;;  %117 = vmatpush.msra.mxu1 %v896_v13 }
  0x20   :  { %219 = vmatpush.msra.mxu2 %v894_v12  ;;  %239 = vmatpush.msra.mxu3 %v896_v13 }
  0x21   :  { %98 = vmatpush.msra.mxu0 %v902_v14  ;;  %118 = vmatpush.msra.mxu1 %v904_v15 }
  0x22   :  { %220 = vmatpush.msra.mxu2 %v902_v14  ;;  %240 = vmatpush.msra.mxu3 %v904_v15 }
  0x23   :  { %99 = vmatpush.msra.mxu0 %v910_v16  ;;  %119 = vmatpush.msra.mxu1 %v912_v17 }
  0x24   :  { %221 = vmatpush.msra.mxu2 %v910_v16  ;;  %241 = vmatpush.msra.mxu3 %v912_v17 }
  0x25   :  { %100 = vmatpush.msra.mxu0 %v918_v18  ;;  %120 = vmatpush.msra.mxu1 %v920_v19 }
  0x26   :  { %222 = vmatpush.msra.mxu2 %v918_v18  ;;  %242 = vmatpush.msra.mxu3 %v920_v19 }
  0x27   :  { %101 = vmatpush.msra.mxu0 %v926_v20  ;;  %121 = vmatpush.msra.mxu1 %v928_v21 }
  0x28   :  { %223 = vmatpush.msra.mxu2 %v926_v20  ;;  %243 = vmatpush.msra.mxu3 %v928_v21 }
  0x29   :  { %102 = vmatpush.msra.mxu0 %v936_v22  ;;  %122 = vmatpush.msra.mxu1 %v938_v23 }
  0x2a   :  { %224 = vmatpush.msra.mxu2 %v936_v22  ;;  %244 = vmatpush.msra.mxu3 %v938_v23 }
  0x2b   :  { %103 = vmatpush.msra.mxu0 %v944_v24  ;;  %123 = vmatpush.msra.mxu1 %v946_v25 }
  0x2c   :  { %225 = vmatpush.msra.mxu2 %v944_v24  ;;  %245 = vmatpush.msra.mxu3 %v946_v25 }
  0x2d   :  { %104 = vmatpush.msra.mxu0 %v952_v26  ;;  %124 = vmatpush.msra.mxu1 %v954_v27 }
  0x2e   :  { %226 = vmatpush.msra.mxu2 %v952_v26  ;;  %246 = vmatpush.msra.mxu3 %v954_v27 }
  0x2f   :  { %105 = vmatpush.msra.mxu0 %v960_v28  ;;  %125 = vmatpush.msra.mxu1 %v962_v29 }
  0x30   :  { %227 = vmatpush.msra.mxu2 %v960_v28  ;;  %247 = vmatpush.msra.mxu3 %v962_v29 }
  0x31   :  { %106 = vmatpush.msra.mxu0 %v968_v30  ;;  %126 = vmatpush.msra.mxu1 %v970_v31 }
  0x32   :  { %107 = vmatmul.f32.vlgmr.msra.gmra.mxu0 %v58_v32  ;;  %127 = vmatmul.f32.vlgmr.msra.gmra.mxu1 %v58_v32 }
  0x33   :  { %228 = vmatpush.msra.mxu2 %v968_v30  ;;  %248 = vmatpush.msra.mxu3 %v970_v31 }
  0x34   :  { %339 = vmatpush.msrb.mxu0 %v852_v0  ;;  %359 = vmatpush.msrb.mxu1 %v854_v1 }
  0x35   :  { %467 = vmatpush.msrb.mxu2 %v852_v0  ;;  %487 = vmatpush.msrb.mxu3 %v854_v1 }
  0x36   :  { %340 = vmatpush.msrb.mxu0 %v856_v2  ;;  %360 = vmatpush.msrb.mxu1 %v860_v3 }
  0x37   :  { %468 = vmatpush.msrb.mxu2 %v856_v2  ;;  %488 = vmatpush.msrb.mxu3 %v860_v3 }
  0x38   :  { %341 = vmatpush.msrb.mxu0 %v862_v4  ;;  %361 = vmatpush.msrb.mxu1 %v864_v5 }
  0x39   :  { %469 = vmatpush.msrb.mxu2 %v862_v4  ;;  %489 = vmatpush.msrb.mxu3 %v864_v5 }
  0x3a   :  { %342 = vmatpush.msrb.mxu0 %v870_v6  ;;  %362 = vmatpush.msrb.mxu1 %v872_v7 }
  0x3b   :  { %470 = vmatpush.msrb.mxu2 %v870_v6  ;;  %490 = vmatpush.msrb.mxu3 %v872_v7 }
  0x3c   :  { %343 = vmatpush.msrb.mxu0 %v878_v8  ;;  %363 = vmatpush.msrb.mxu1 %v880_v9 }
  0x3d   :  { %471 = vmatpush.msrb.mxu2 %v878_v8  ;;  %491 = vmatpush.msrb.mxu3 %v880_v9 }
  0x3e   :  { %344 = vmatpush.msrb.mxu0 %v886_v10  ;;  %364 = vmatpush.msrb.mxu1 %v888_v11 }
  0x3f   :  { %472 = vmatpush.msrb.mxu2 %v886_v10  ;;  %492 = vmatpush.msrb.mxu3 %v888_v11 }
  0x40   :  { %345 = vmatpush.msrb.mxu0 %v894_v12  ;;  %365 = vmatpush.msrb.mxu1 %v896_v13 }
  0x41   :  { %473 = vmatpush.msrb.mxu2 %v894_v12  ;;  %493 = vmatpush.msrb.mxu3 %v896_v13 }
  0x42   :  { %346 = vmatpush.msrb.mxu0 %v902_v14  ;;  %366 = vmatpush.msrb.mxu1 %v904_v15 }
  0x43   :  { %474 = vmatpush.msrb.mxu2 %v902_v14  ;;  %494 = vmatpush.msrb.mxu3 %v904_v15 }
  0x44   :  { %347 = vmatpush.msrb.mxu0 %v910_v16  ;;  %367 = vmatpush.msrb.mxu1 %v912_v17 }
  0x45   :  { %475 = vmatpush.msrb.mxu2 %v910_v16  ;;  %495 = vmatpush.msrb.mxu3 %v912_v17 }
  0x46   :  { %348 = vmatpush.msrb.mxu0 %v918_v18  ;;  %368 = vmatpush.msrb.mxu1 %v920_v19 }
  0x47   :  { %476 = vmatpush.msrb.mxu2 %v918_v18  ;;  %496 = vmatpush.msrb.mxu3 %v920_v19 }
  0x48   :  { %349 = vmatpush.msrb.mxu0 %v926_v20  ;;  %369 = vmatpush.msrb.mxu1 %v928_v21 }
  0x49   :  { %477 = vmatpush.msrb.mxu2 %v926_v20  ;;  %497 = vmatpush.msrb.mxu3 %v928_v21 }
  0x4a   :  { %350 = vmatpush.msrb.mxu0 %v936_v22  ;;  %370 = vmatpush.msrb.mxu1 %v938_v23 }
  0x4b   :  { %478 = vmatpush.msrb.mxu2 %v936_v22  ;;  %498 = vmatpush.msrb.mxu3 %v938_v23 }
  0x4c   :  { %351 = vmatpush.msrb.mxu0 %v944_v24  ;;  %371 = vmatpush.msrb.mxu1 %v946_v25 }
  0x4d   :  { %479 = vmatpush.msrb.mxu2 %v944_v24  ;;  %499 = vmatpush.msrb.mxu3 %v946_v25 }
  0x4e   :  { %352 = vmatpush.msrb.mxu0 %v952_v26  ;;  %372 = vmatpush.msrb.mxu1 %v954_v27 }
  0x4f   :  { %480 = vmatpush.msrb.mxu2 %v952_v26  ;;  %500 = vmatpush.msrb.mxu3 %v954_v27 }
  0x50   :  { %353 = vmatpush.msrb.mxu0 %v960_v28  ;;  %373 = vmatpush.msrb.mxu1 %v962_v29 }
  0x51   :  { %481 = vmatpush.msrb.mxu2 %v960_v28  ;;  %501 = vmatpush.msrb.mxu3 %v962_v29 }
  0x52   :  { %354 = vmatpush.msrb.mxu0 %v968_v30  ;;  %374 = vmatpush.msrb.mxu1 %v970_v31 }
  0x53   :  { %482 = vmatpush.msrb.mxu2 %v968_v30  ;;  %502 = vmatpush.msrb.mxu3 %v970_v31 }
  0x54   :  { %595 = vmatpush.msra.mxu0 %v852_v0  ;;  %615 = vmatpush.msra.mxu1 %v854_v1 }
  0x56   :  { %596 = vmatpush.msra.mxu0 %v856_v2  ;;  %616 = vmatpush.msra.mxu1 %v860_v3 }
  0x58   :  { %597 = vmatpush.msra.mxu0 %v862_v4  ;;  %617 = vmatpush.msra.mxu1 %v864_v5 }
  0x5a   :  { %598 = vmatpush.msra.mxu0 %v870_v6  ;;  %618 = vmatpush.msra.mxu1 %v872_v7 }
  0x5c   :  { %599 = vmatpush.msra.mxu0 %v878_v8  ;;  %619 = vmatpush.msra.mxu1 %v880_v9 }
  0x5e   :  { %600 = vmatpush.msra.mxu0 %v886_v10  ;;  %620 = vmatpush.msra.mxu1 %v888_v11 }
  0x60   :  { %601 = vmatpush.msra.mxu0 %v894_v12  ;;  %621 = vmatpush.msra.mxu1 %v896_v13 }
  0x62   :  { %602 = vmatpush.msra.mxu0 %v902_v14  ;;  %622 = vmatpush.msra.mxu1 %v904_v15 }
  0x64   :  { %603 = vmatpush.msra.mxu0 %v910_v16  ;;  %623 = vmatpush.msra.mxu1 %v912_v17 }
  0x66   :  { %604 = vmatpush.msra.mxu0 %v918_v18  ;;  %624 = vmatpush.msra.mxu1 %v920_v19 }
  0x68   :  { %605 = vmatpush.msra.mxu0 %v926_v20  ;;  %625 = vmatpush.msra.mxu1 %v928_v21 }
  0x6a   :  { %606 = vmatpush.msra.mxu0 %v936_v22  ;;  %626 = vmatpush.msra.mxu1 %v938_v23 }
  0x6c   :  { %607 = vmatpush.msra.mxu0 %v944_v24  ;;  %627 = vmatpush.msra.mxu1 %v946_v25 }
  0x6e   :  { %608 = vmatpush.msra.mxu0 %v952_v26  ;;  %628 = vmatpush.msra.mxu1 %v954_v27 }
  0x70   :  { %609 = vmatpush.msra.mxu0 %v960_v28  ;;  %629 = vmatpush.msra.mxu1 %v962_v29 }
  0x72   :  { %610 = vmatpush.msra.mxu0 %v968_v30  ;;  %630 = vmatpush.msra.mxu1 %v970_v31 }
  0xaf   :  { %v108_v33 = vpop.f32.mrf.mxu0  ;;  %v128_v34 = vpop.f32.mrf.mxu1 }
  0xb0   :  { %v132_v35 = vsel %vm131_vm0, %v108_v33, -inf  ;;  %v133_v36 = vsel %vm131_vm0, %v128_v34, -inf }
  0xb1   :  { %v134_v37 = vmax.f32 %v132_v35, %v133_v36 }
  0xb3   :  { %135 = vmax.xlane.f32.xlu0 %v134_v37 }
 0x126   :  { %v136_v38 = vpop.xlane.xlu0 %135 }
 0x127   :  { %v137_v39 = vrot.slane %v136_v38, 4 }
 0x129   :  { %v138_v40 = vmax.f32 %v136_v38, %v137_v39 }
 0x12b   :  { %v139_v41 = vrot.slane %v138_v40, 2 }
 0x12d   :  { %v140_v42 = vmax.f32 %v138_v40, %v139_v41 }
 0x12f   :  { %v141_v43 = vrot.slane %v140_v42, 1 }
 0x131   :  { %v142_v44 = vmax.f32 %v140_v42, %v141_v43 }
 0x133   :  { %707 = vpush %v142_v44 }
 0x164   :  { %s708_s29 = spop %707 }
 0x165   :  { %v144_v48 = vstv %s708_s29 }
 0x166   :  { %vm145_vm1 = vcmp.eq.f32.partialorder %v108_v33, %v144_v48  ;;  %vm146_vm2 = vcmp.eq.f32.partialorder %v128_v34, %v144_v48 }
 0x167   :  { %v147_v49 = vsel %vm145_vm1, %v1081_v46, 256  ;;  %v148_v50 = vsel %vm146_vm2, %v1084_v47, 256 }
 0x168   :  { %v149_v51 = vsel %vm131_vm0, %v147_v49, 2147483647  ;;  %v150_v52 = vsel %vm131_vm0, %v148_v50, 2147483647 }
 0x169   :  { %vm151_vm3 = vcmp.lt.s32.totalorder %v149_v51, %v150_v52 }
 0x16a   :  { %v152_v53 = vsel %vm151_vm3, %v149_v51, %v150_v52 }
 0x16b   :  { %v154_v54 = vshra.s32 %v152_v53, 16  ;;  %v153_v56 = vand.u32 65535, %v152_v53 }
 0x16d   :  { %v156_v55 = vcvt.s32.f32 %v154_v54  ;;  %v155_v58 = vcvt.s32.f32 %v153_v56 }
 0x16f   :  { %157 = vmin.xlane.f32.xlu0 %v156_v55 }
 0x1e2   :  { %v158_v57 = vpop.xlane.xlu0 %157 }
 0x1e3   :  { %vm159_vm4 = vcmp.eq.f32.partialorder %v156_v55, %v158_v57  ;;  %v164_v60 = vcvt.f32.s32 %v158_v57 }
 0x1e4   :  { %v160_v59 = vsel %vm159_vm4, %v155_v58, inf }
 0x1e5   :  { %161 = vmin.xlane.f32.xlu1 %v160_v59  ;;  %v165_v62 = vshll.u32 %v164_v60, 16 }
 0x258   :  { %v162_v61 = vpop.xlane.xlu1 %161 }
 0x259   :  { %v163_v63 = vcvt.f32.s32 %v162_v61 }
 0x25b   :  { %v166_v0 = vadd.s32 %v165_v62, %v163_v63 }
 0x25d   :  { %v167_v1 = vrot.slane %v166_v0, 4 }
 0x25f   :  { %vm168_vm5 = vcmp.lt.s32.totalorder %v166_v0, %v167_v1 }
 0x260   :  { %v169_v2 = vsel %vm168_vm5, %v166_v0, %v167_v1 }
 0x261   :  { %v170_v3 = vrot.slane %v169_v2, 2 }
 0x263   :  { %vm171_vm6 = vcmp.lt.s32.totalorder %v169_v2, %v170_v3 }
 0x264   :  { %v172_v4 = vsel %vm171_vm6, %v169_v2, %v170_v3 }
 0x265   :  { %v173_v5 = vrot.slane %v172_v4, 1 }
 0x267   :  { %vm174_vm7 = vcmp.lt.s32.totalorder %v172_v4, %v173_v5 }
 0x268   :  { %v175_v6 = vsel %vm174_vm7, %v172_v4, %v173_v5 }
 0x269   :  { %709 = vpush %v175_v6 }
 0x29a   :  { %s1090_s30 = spop %709 }
 0x29b   :  { %178 = sst [smem:[#allocation9]] %s1090_s30  ;;  %s179_s4 = scalar_lea.vmem [#allocation4], %s1090_s30 }
 0x29c   :  { %v180_v7 = vld [vmem:[%s179_s4] sm:$0x1]  ;;  %p301_p1 = scmp.eq.s32.totalorder %s1090_s30, 2 }
 0x29d   :  { %229 = vmatmul.f32.vlgmr.msra.gmra.mxu2 %v180_v7  ;;  %249 = vmatmul.f32.vlgmr.msra.gmra.mxu3 %v180_v7 }
 0x320   :  { %v230_v8 = vpop.f32.mrf.mxu2  ;;  %v250_v9 = vpop.f32.mrf.mxu3 }
 0x321   :  { %v253_v10 = vsel %vm131_vm0, %v230_v8, -inf  ;;  %v254_v11 = vsel %vm131_vm0, %v250_v9, -inf }
 0x322   :  { %v255_v12 = vmax.f32 %v253_v10, %v254_v11 }
 0x324   :  { %256 = vmax.xlane.f32.xlu1 %v255_v12 }
 0x397   :  { %v257_v13 = vpop.xlane.xlu1 %256 }
 0x398   :  { %v258_v14 = vrot.slane %v257_v13, 4 }
 0x39a   :  { %v259_v15 = vmax.f32 %v257_v13, %v258_v14 }
 0x39c   :  { %v260_v16 = vrot.slane %v259_v15, 2 }
 0x39e   :  { %v261_v17 = vmax.f32 %v259_v15, %v260_v16 }
 0x3a0   :  { %v262_v18 = vrot.slane %v261_v17, 1 }
 0x3a2   :  { %v263_v19 = vmax.f32 %v261_v17, %v262_v18 }
 0x3a4   :  { %711 = vpush %v263_v19 }
 0x3d5   :  { %s712_s5 = spop %711 }
 0x3d6   :  { %v265_v20 = vstv %s712_s5 }
 0x3d7   :  { %vm266_vm8 = vcmp.eq.f32.partialorder %v230_v8, %v265_v20  ;;  %vm267_vm9 = vcmp.eq.f32.partialorder %v250_v9, %v265_v20 }
 0x3d8   :  { %v268_v21 = vsel %vm266_vm8, %v1081_v46, 256  ;;  %v269_v22 = vsel %vm267_vm9, %v1084_v47, 256 }
 0x3d9   :  { %v270_v23 = vsel %vm131_vm0, %v268_v21, 2147483647  ;;  %v271_v24 = vsel %vm131_vm0, %v269_v22, 2147483647 }
 0x3da   :  { %vm272_vm10 = vcmp.lt.s32.totalorder %v270_v23, %v271_v24 }
 0x3db   :  { %v273_v25 = vsel %vm272_vm10, %v270_v23, %v271_v24 }
 0x3dc   :  { %v275_v26 = vshra.s32 %v273_v25, 16  ;;  %v274_v28 = vand.u32 65535, %v273_v25 }
 0x3de   :  { %v277_v27 = vcvt.s32.f32 %v275_v26  ;;  %v276_v30 = vcvt.s32.f32 %v274_v28 }
 0x3e0   :  { %278 = vmin.xlane.f32.xlu2 %v277_v27 }
 0x453   :  { %v279_v29 = vpop.xlane.xlu2 %278 }
 0x454   :  { %vm280_vm11 = vcmp.eq.f32.partialorder %v277_v27, %v279_v29  ;;  %v285_v32 = vcvt.f32.s32 %v279_v29 }
 0x455   :  { %v281_v31 = vsel %vm280_vm11, %v276_v30, inf }
 0x456   :  { %282 = vmin.xlane.f32.xlu2 %v281_v31  ;;  %v286_v34 = vshll.u32 %v285_v32, 16 }
 0x4c9   :  { %v283_v33 = vpop.xlane.xlu2 %282 }
 0x4ca   :  { %v284_v35 = vcvt.f32.s32 %v283_v33 }
 0x4cc   :  { %v287_v36 = vadd.s32 %v286_v34, %v284_v35 }
 0x4ce   :  { %v288_v37 = vrot.slane %v287_v36, 4 }
 0x4d0   :  { %vm289_vm12 = vcmp.lt.s32.totalorder %v287_v36, %v288_v37 }
 0x4d1   :  { %v290_v38 = vsel %vm289_vm12, %v287_v36, %v288_v37 }
 0x4d2   :  { %v291_v39 = vrot.slane %v290_v38, 2 }
 0x4d4   :  { %vm292_vm13 = vcmp.lt.s32.totalorder %v290_v38, %v291_v39 }
 0x4d5   :  { %v293_v40 = vsel %vm292_vm13, %v290_v38, %v291_v39 }
 0x4d6   :  { %v294_v41 = vrot.slane %v293_v40, 1 }
 0x4d8   :  { %vm295_vm14 = vcmp.lt.s32.totalorder %v293_v40, %v294_v41 }
 0x4d9   :  { %v296_v42 = vsel %vm295_vm14, %v293_v40, %v294_v41 }
 0x4da   :  { %713 = vpush %v296_v42 }
 0x50b   :  { %s1100_s6 = spop %713 }
 0x50c   :  { %299 = sst [smem:[#allocation9 + $0x1]] %s1100_s6  ;;  %s305_s7 = scalar_lea.vmem [#allocation4], %s1100_s6 }
 0x50d   :  { %v306_v43 = vld [vmem:[%s305_s7] sm:$0x1]  ;;  %p300_p0 = scmp.eq.s32.totalorder %s1100_s6, 2 }
 0x50e   :  { %355 = vmatmul.f32.vlgmr.msrb.gmra.mxu0 %v306_v43  ;;  %375 = vmatmul.f32.vlgmr.msrb.gmra.mxu1 %v306_v43 }
 0x50f   :  { %p302_p2 = por %p301_p1, %p300_p0 }
 0x511   :  { %s303_s9 = scalar_select %p302_p2, 1, 0 }
 0x513   :  { %s1160_s9 = smov (!%p302_p2, %s303_s9), 0 }
 0x514   :  { %p424_p3 = scmp.ne.s32.totalorder %s1160_s9, 0 }
 0x58b   :  { %v356_v44 = vpop.f32.mrf.mxu0  ;;  %v376_v45 = vpop.f32.mrf.mxu1 }
 0x58c   :  { %v379_v48 = vsel %vm131_vm0, %v356_v44, -inf  ;;  %v380_v49 = vsel %vm131_vm0, %v376_v45, -inf }
 0x58d   :  { %v381_v50 = vmax.f32 %v379_v48, %v380_v49 }
 0x58f   :  { %382 = vmax.xlane.f32.xlu0 %v381_v50 }
 0x602   :  { %v383_v51 = vpop.xlane.xlu0 %382 }
 0x603   :  { %v384_v52 = vrot.slane %v383_v51, 4 }
 0x605   :  { %v385_v53 = vmax.f32 %v383_v51, %v384_v52 }
 0x607   :  { %v386_v54 = vrot.slane %v385_v53, 2 }
 0x609   :  { %v387_v55 = vmax.f32 %v385_v53, %v386_v54 }
 0x60b   :  { %v388_v56 = vrot.slane %v387_v55, 1 }
 0x60d   :  { %v389_v57 = vmax.f32 %v387_v55, %v388_v56 }
 0x60f   :  { %715 = vpush %v389_v57 }
 0x640   :  { %s716_s8 = spop %715 }
 0x641   :  { %v391_v58 = vstv %s716_s8 }
 0x642   :  { %vm392_vm15 = vcmp.eq.f32.partialorder %v356_v44, %v391_v58  ;;  %vm393_vm1 = vcmp.eq.f32.partialorder %v376_v45, %v391_v58 }
 0x643   :  { %v394_v59 = vsel %vm392_vm15, %v1081_v46, 256  ;;  %v395_v60 = vsel %vm393_vm1, %v1084_v47, 256 }
 0x644   :  { %v396_v61 = vsel %vm131_vm0, %v394_v59, 2147483647  ;;  %v397_v62 = vsel %vm131_vm0, %v395_v60, 2147483647 }
 0x645   :  { %vm398_vm2 = vcmp.lt.s32.totalorder %v396_v61, %v397_v62 }
 0x646   :  { %v399_v63 = vsel %vm398_vm2, %v396_v61, %v397_v62 }
 0x647   :  { %v401_v0 = vshra.s32 %v399_v63, 16  ;;  %v400_v2 = vand.u32 65535, %v399_v63 }
 0x649   :  { %v403_v1 = vcvt.s32.f32 %v401_v0  ;;  %v402_v4 = vcvt.s32.f32 %v400_v2 }
 0x64b   :  { %404 = vmin.xlane.f32.xlu1 %v403_v1 }
 0x6be   :  { %v405_v3 = vpop.xlane.xlu1 %404 }
 0x6bf   :  { %vm406_vm3 = vcmp.eq.f32.partialorder %v403_v1, %v405_v3  ;;  %v411_v6 = vcvt.f32.s32 %v405_v3 }
 0x6c0   :  { %v407_v5 = vsel %vm406_vm3, %v402_v4, inf }
 0x6c1   :  { %408 = vmin.xlane.f32.xlu2 %v407_v5  ;;  %v412_v8 = vshll.u32 %v411_v6, 16 }
 0x734   :  { %v409_v7 = vpop.xlane.xlu2 %408 }
 0x735   :  { %v410_v9 = vcvt.f32.s32 %v409_v7 }
 0x737   :  { %v413_v10 = vadd.s32 %v412_v8, %v410_v9 }
 0x739   :  { %v414_v11 = vrot.slane %v413_v10, 4 }
 0x73b   :  { %vm415_vm4 = vcmp.lt.s32.totalorder %v413_v10, %v414_v11 }
 0x73c   :  { %v416_v12 = vsel %vm415_vm4, %v413_v10, %v414_v11 }
 0x73d   :  { %v417_v13 = vrot.slane %v416_v12, 2 }
 0x73f   :  { %vm418_vm5 = vcmp.lt.s32.totalorder %v416_v12, %v417_v13 }
 0x740   :  { %v419_v14 = vsel %vm418_vm5, %v416_v12, %v417_v13 }
 0x741   :  { %v420_v15 = vrot.slane %v419_v14, 1 }
 0x743   :  { %vm421_vm6 = vcmp.lt.s32.totalorder %v419_v14, %v420_v15 }
 0x744   :  { %v422_v16 = vsel %vm421_vm6, %v419_v14, %v420_v15 }
 0x745   :  { %717 = vpush %v422_v16 }
 0x776   :  { %s718_s10 = spop %717 }
 0x777   :  { %s1162_s10 = smov (%p424_p3, %s718_s10), 2 }
 0x778   :  { %427 = sst [smem:[#allocation9 + $0x2]] %s1162_s10  ;;  %s433_s11 = scalar_lea.vmem [#allocation4], %s1162_s10 }
 0x779   :  { %v434_v17 = vld [vmem:[%s433_s11] sm:$0x1]  ;;  %p428_p4 = scmp.eq.s32.totalorder %s1162_s10, 2 }
 0x77a   :  { %483 = vmatmul.f32.vlgmr.msrb.gmra.mxu2 %v434_v17  ;;  %503 = vmatmul.f32.vlgmr.msrb.gmra.mxu3 %v434_v17 }
 0x77b   :  { %p429_p5 = por %p428_p4, %p300_p0 }
 0x77d   :  { %s430_s13 = scalar_select %p429_p5, 1, 0 }
 0x77f   :  { %p431_p6 = scmp.gt.s32.totalorder %s1160_s9, %s430_s13 }
 0x781   :  { %s1164_s9 = smov (!%p431_p6, %s1160_s9), %s430_s13 }
 0x782   :  { %p552_p7 = scmp.ne.s32.totalorder %s1164_s9, 0 }
 0x7fd   :  { %v484_v18 = vpop.f32.mrf.mxu2  ;;  %v504_v19 = vpop.f32.mrf.mxu3 }
 0x7fe   :  { %v507_v20 = vsel %vm131_vm0, %v484_v18, -inf  ;;  %v508_v21 = vsel %vm131_vm0, %v504_v19, -inf }
 0x7ff   :  { %v509_v22 = vmax.f32 %v507_v20, %v508_v21 }
 0x801   :  { %510 = vmax.xlane.f32.xlu0 %v509_v22 }
 0x874   :  { %v511_v23 = vpop.xlane.xlu0 %510 }
 0x875   :  { %v512_v24 = vrot.slane %v511_v23, 4 }
 0x877   :  { %v513_v25 = vmax.f32 %v511_v23, %v512_v24 }
 0x879   :  { %v514_v26 = vrot.slane %v513_v25, 2 }
 0x87b   :  { %v515_v27 = vmax.f32 %v513_v25, %v514_v26 }
 0x87d   :  { %v516_v28 = vrot.slane %v515_v27, 1 }
 0x87f   :  { %v517_v29 = vmax.f32 %v515_v27, %v516_v28 }
 0x881   :  { %719 = vpush %v517_v29 }
 0x8b2   :  { %s720_s12 = spop %719 }
 0x8b3   :  { %v519_v30 = vstv %s720_s12 }
 0x8b4   :  { %vm520_vm7 = vcmp.eq.f32.partialorder %v484_v18, %v519_v30  ;;  %vm521_vm8 = vcmp.eq.f32.partialorder %v504_v19, %v519_v30 }
 0x8b5   :  { %v522_v31 = vsel %vm520_vm7, %v1081_v46, 256  ;;  %v523_v32 = vsel %vm521_vm8, %v1084_v47, 256 }
 0x8b6   :  { %v524_v33 = vsel %vm131_vm0, %v522_v31, 2147483647  ;;  %v525_v34 = vsel %vm131_vm0, %v523_v32, 2147483647 }
 0x8b7   :  { %vm526_vm9 = vcmp.lt.s32.totalorder %v524_v33, %v525_v34 }
 0x8b8   :  { %v527_v35 = vsel %vm526_vm9, %v524_v33, %v525_v34 }
 0x8b9   :  { %v529_v36 = vshra.s32 %v527_v35, 16  ;;  %v528_v38 = vand.u32 65535, %v527_v35 }
 0x8bb   :  { %v531_v37 = vcvt.s32.f32 %v529_v36  ;;  %v530_v40 = vcvt.s32.f32 %v528_v38 }
 0x8bd   :  { %532 = vmin.xlane.f32.xlu1 %v531_v37 }
 0x930   :  { %v533_v39 = vpop.xlane.xlu1 %532 }
 0x931   :  { %vm534_vm10 = vcmp.eq.f32.partialorder %v531_v37, %v533_v39  ;;  %v539_v42 = vcvt.f32.s32 %v533_v39 }
 0x932   :  { %v535_v41 = vsel %vm534_vm10, %v530_v40, inf }
 0x933   :  { %536 = vmin.xlane.f32.xlu2 %v535_v41  ;;  %v540_v44 = vshll.u32 %v539_v42, 16 }
 0x9a6   :  { %v537_v43 = vpop.xlane.xlu2 %536 }
 0x9a7   :  { %v538_v45 = vcvt.f32.s32 %v537_v43 }
 0x9a9   :  { %v541_v48 = vadd.s32 %v540_v44, %v538_v45 }
 0x9ab   :  { %v542_v49 = vrot.slane %v541_v48, 4 }
 0x9ad   :  { %vm543_vm11 = vcmp.lt.s32.totalorder %v541_v48, %v542_v49 }
 0x9ae   :  { %v544_v50 = vsel %vm543_vm11, %v541_v48, %v542_v49 }
 0x9af   :  { %v545_v51 = vrot.slane %v544_v50, 2 }
 0x9b1   :  { %vm546_vm12 = vcmp.lt.s32.totalorder %v544_v50, %v545_v51 }
 0x9b2   :  { %v547_v52 = vsel %vm546_vm12, %v544_v50, %v545_v51 }
 0x9b3   :  { %v548_v53 = vrot.slane %v547_v52, 1 }
 0x9b5   :  { %vm549_vm13 = vcmp.lt.s32.totalorder %v547_v52, %v548_v53 }
 0x9b6   :  { %v550_v54 = vsel %vm549_vm13, %v547_v52, %v548_v53 }
 0x9b7   :  { %721 = vpush %v550_v54 }
 0x9e8   :  { %s722_s14 = spop %721 }
 0x9e9   :  { %s1166_s14 = smov (%p552_p7, %s722_s14), 2 }
 0x9ea   :  { %555 = sst [smem:[#allocation9 + $0x3]] %s1166_s14  ;;  %s561_s15 = scalar_lea.vmem [#allocation4], %s1166_s14 }
 0x9eb   :  { %v562_v55 = vld [vmem:[%s561_s15] sm:$0x1]  ;;  %p556_p8 = scmp.eq.s32.totalorder %s1166_s14, 2 }
 0x9ec   :  { %611 = vmatmul.f32.vlgmr.msra.gmra.mxu0 %v562_v55  ;;  %631 = vmatmul.f32.vlgmr.msra.gmra.mxu1 %v562_v55 }
 0x9ed   :  { %p557_p9 = por %p556_p8, %p428_p4 }
 0x9ef   :  { %s558_s17 = scalar_select %p557_p9, 1, 0 }
 0x9f1   :  { %p559_p10 = scmp.gt.s32.totalorder %s1164_s9, %s558_s17 }
 0x9f3   :  { %s1168_s9 = smov (!%p559_p10, %s1164_s9), %s558_s17 }
 0x9f4   :  { %p680_p11 = scmp.ne.s32.totalorder %s1168_s9, 0 }
 0xa69   :  { %v612_v56 = vpop.f32.mrf.mxu0  ;;  %v632_v57 = vpop.f32.mrf.mxu1 }
 0xa6a   :  { %v635_v58 = vsel %vm131_vm0, %v612_v56, -inf  ;;  %v636_v59 = vsel %vm131_vm0, %v632_v57, -inf }
 0xa6b   :  { %v637_v60 = vmax.f32 %v635_v58, %v636_v59 }
 0xa6d   :  { %638 = vmax.xlane.f32.xlu0 %v637_v60 }
 0xae0   :  { %v639_v61 = vpop.xlane.xlu0 %638 }
 0xae1   :  { %v640_v62 = vrot.slane %v639_v61, 4 }
 0xae3   :  { %v641_v63 = vmax.f32 %v639_v61, %v640_v62 }
 0xae5   :  { %v642_v0 = vrot.slane %v641_v63, 2 }
 0xae7   :  { %v643_v1 = vmax.f32 %v641_v63, %v642_v0 }
 0xae9   :  { %v644_v2 = vrot.slane %v643_v1, 1 }
 0xaeb   :  { %v645_v3 = vmax.f32 %v643_v1, %v644_v2 }
 0xaed   :  { %723 = vpush %v645_v3 }
 0xb1e   :  { %s724_s16 = spop %723 }
 0xb1f   :  { %v647_v4 = vstv %s724_s16 }
 0xb20   :  { %vm648_vm14 = vcmp.eq.f32.partialorder %v612_v56, %v647_v4  ;;  %vm649_vm15 = vcmp.eq.f32.partialorder %v632_v57, %v647_v4 }
 0xb21   :  { %v650_v5 = vsel %vm648_vm14, %v1081_v46, 256  ;;  %v651_v6 = vsel %vm649_vm15, %v1084_v47, 256 }
 0xb22   :  { %v652_v7 = vsel %vm131_vm0, %v650_v5, 2147483647  ;;  %v653_v8 = vsel %vm131_vm0, %v651_v6, 2147483647 }
 0xb23   :  { %vm654_vm1 = vcmp.lt.s32.totalorder %v652_v7, %v653_v8 }
 0xb24   :  { %v655_v9 = vsel %vm654_vm1, %v652_v7, %v653_v8 }
 0xb25   :  { %v657_v10 = vshra.s32 %v655_v9, 16  ;;  %v656_v12 = vand.u32 65535, %v655_v9 }
 0xb27   :  { %v659_v11 = vcvt.s32.f32 %v657_v10  ;;  %v658_v14 = vcvt.s32.f32 %v656_v12 }
 0xb29   :  { %660 = vmin.xlane.f32.xlu1 %v659_v11 }
 0xb9c   :  { %v661_v13 = vpop.xlane.xlu1 %660 }
 0xb9d   :  { %vm662_vm2 = vcmp.eq.f32.partialorder %v659_v11, %v661_v13  ;;  %v667_v16 = vcvt.f32.s32 %v661_v13 }
 0xb9e   :  { %v663_v15 = vsel %vm662_vm2, %v658_v14, inf }
 0xb9f   :  { %664 = vmin.xlane.f32.xlu2 %v663_v15  ;;  %v668_v47 = vshll.u32 %v667_v16, 16 }
 0xc12   :  { %v665_v46 = vpop.xlane.xlu2 %664 }
 0xc13   :  { %v666_v17 = vcvt.f32.s32 %v665_v46 }
 0xc15   :  { %v669_v18 = vadd.s32 %v668_v47, %v666_v17 }
 0xc17   :  { %v670_v19 = vrot.slane %v669_v18, 4 }
 0xc19   :  { %vm671_vm0 = vcmp.lt.s32.totalorder %v669_v18, %v670_v19 }
 0xc1a   :  { %v672_v20 = vsel %vm671_vm0, %v669_v18, %v670_v19 }
 0xc1b   :  { %v673_v21 = vrot.slane %v672_v20, 2 }
 0xc1d   :  { %vm674_vm3 = vcmp.lt.s32.totalorder %v672_v20, %v673_v21 }
 0xc1e   :  { %v675_v22 = vsel %vm674_vm3, %v672_v20, %v673_v21 }
 0xc1f   :  { %v676_v23 = vrot.slane %v675_v22, 1 }
 0xc21   :  { %vm677_vm4 = vcmp.lt.s32.totalorder %v675_v22, %v676_v23 }
 0xc22   :  { %v678_v24 = vsel %vm677_vm4, %v675_v22, %v676_v23 }
 0xc23   :  { %725 = vpush %v678_v24 }
 0xc54   :  { %s726_s21 = spop %725 }
 0xc55   :  { %s1170_s21 = smov (%p680_p11, %s726_s21), 2 }
 0xc56   :  { %683 = sst [smem:[#allocation9 + $0x4]] %s1170_s21 }
 0xc57   :  { %692 = dma.smem_to_vmem %s822_s22, 16, %s690_s20, [#allocation6]  }
 0xc58   :  { %813 = dma.done.wait [#allocation6], 16  }
 0xc59   :  { %814 = vsyncadd [#allocation6], 4294967280 }
 0xc5a   :  { %697 = sfence }
 0xc5b   :  { %698 = vsyncpa [#allocation5], 1 }
 0xc5c   :  { %699 = vsyncpa [#allocation8], 1 }
 0xc5d   :  { %700 = vsyncpa [#allocation6], 1 }

</bundles_post_ra>
